<compile_context>
chip_gen: v7x
topology: tpu7x:2x2x1
jax: 0.10.0
libtpu: 0.0.40
codegen_flags: <defaults>
</compile_context>

<pallas_src>
import numpy as np
import jax
import jax.numpy as jnp
from jax.experimental import pallas as pl
from jax.experimental.pallas import tpu as pltpu


def _preproc_norm_kernel(x_ref, scale_ref, bias_ref, o_ref):
    # x_ref:     (TM, TN) block, native input dtype (e.g. uint8)
    # scale_ref: (TM, 1) f32, per-row scale = 1 / (255 * s[channel(row)])
    # bias_ref:  (TM, 1) f32, per-row bias  = -m[channel(row)] / s[channel(row)]
    x = x_ref[...].astype(jnp.float32)
    y = x * scale_ref[...] + bias_ref[...]          # one mul + one add per element
    o_ref[...] = y.astype(o_ref.dtype)


def _cdiv(a, b):
    return -(-a // b)


def _choose_lane_tile(HW, tm, out_itemsize, target_block_bytes):
    """Lane (last-dim) tile: full extent if it fits the byte budget, otherwise the
    largest multiple of 128 <= budget that divides HW (falling back to the one
    minimizing the ragged trailing block)."""
    budget_cols = max(target_block_bytes // (out_itemsize * tm), 128)
    if HW <= budget_cols:
        return HW                          # full-extent block: exempt from 128 rule
    want = max((budget_cols // 128) * 128, 128)
    best, best_pad = want, (-HW) % want
    cand = want
    while cand >= 128:                     # trace-time Python loop, cheap
        pad = (-HW) % cand
        if pad == 0:
            return cand                    # divides HW: no ragged trailing block
        if pad < best_pad:
            best, best_pad = cand, pad
        cand -= 128
    return best


def preproc_norm(x, m, s, *, out_dtype=jnp.float32, max_tile_rows=256,
                 target_block_bytes=4 * 1024 * 1024, small_fallback=True):
    """ImageNet-style normalization: (x/255 - m) / s, broadcast per channel.

    x: (N, C, H, W), any real/int dtype (uint8 recommended - fewest HBM bytes).
    m, s: per-channel mean / std, shape (C,), (C,1), or (C,1,1).
    out_dtype: jnp.float32 (default, matches PyTorch) or jnp.bfloat16 (cuts the
               write-dominated HBM traffic ~1.7x; math stays f32).
    """
    N, C, H, W = x.shape
    HW = H * W
    R = N * C
    out_dtype = np.dtype(out_dtype)

    m = jnp.asarray(m, jnp.float32).reshape(C)
    s = jnp.asarray(s, jnp.float32).reshape(C)
    # Fold /255, -m, /s into one (scale, bias) pair, replicated per (n, c) row.
    scale = jnp.tile(1.0 / (255.0 * s), N).reshape(R, 1)
    bias = jnp.tile(-m / s, N).reshape(R, 1)

    # Row (sublane) tile: full extent when small (exempt from the tiling rule),
    # otherwise 256 (multiple of 8/16/32 -> valid for f32/bf16/int8 inputs).
    tm = R if R <= max_tile_rows else max_tile_rows
    tn = _choose_lane_tile(HW, tm, out_dtype.itemsize, target_block_bytes)

    gr, gc = _cdiv(R, tm), _cdiv(HW, tn)

    # v7x guardrail: two TensorCores share the "parallel" grid axes; if the row
    # axis has a single block and the lane axis an odd (>1) block count, one core
    # gets the short end.  Nudge the lane-block count to the next even value.
    if gr == 1 and gc > 1 and gc % 2 == 1:
        new_gc = gc + 1
        cand = ((_cdiv(HW, new_gc) + 127) // 128) * 128
        if cand >= 128 and _cdiv(HW, cand) == new_gc:
            tn, gc = cand, new_gc

    if small_fallback and gr == 1 and gc == 1:
        # Single-step grid: no pipelining, launch + DMA setup dominates.  XLA's
        # fused elementwise is at least as fast for tiny preprocessing calls.
        y = x.astype(jnp.float32) * scale.reshape(N, C, 1, 1) + bias.reshape(N, C, 1, 1)
        return y.astype(out_dtype)

    x2 = x.reshape(R, HW)                  # keep native dtype (no pre-cast!)

    # Explicit VMEM limit: double-buffered in + out blocks plus headroom.
    blk_bytes = tm * tn * (x.dtype.itemsize + out_dtype.itemsize)
    vmem_limit = int(min(64 * 1024 * 1024, max(4 * blk_bytes, 16 * 1024 * 1024)))

    out = pl.pallas_call(
        _preproc_norm_kernel,
        out_shape=jax.ShapeDtypeStruct((R, HW), out_dtype),
        grid_spec=pltpu.PrefetchScalarGridSpec(
            num_scalar_prefetch=0,
            grid=(gr, gc),
            in_specs=[
                pl.BlockSpec((tm, tn), lambda i, j: (i, j)),
                pl.BlockSpec((tm, 1), lambda i, j: (i, 0)),   # scale
                pl.BlockSpec((tm, 1), lambda i, j: (i, 0)),   # bias
            ],
            out_specs=pl.BlockSpec((tm, tn), lambda i, j: (i, j)),
        ),
        compiler_params=pltpu.CompilerParams(
            # Both axes independent -> v7x dual-TC can split the HBM stream.
            dimension_semantics=("parallel", "parallel"),
            vmem_limit_bytes=vmem_limit,
        ),
    )(x2, scale, bias)
    return out.reshape(N, C, H, W)


if __name__ == "__main__":
    key = jax.random.PRNGKey(0)

    # Small NCHW batch with C=3 (as the ImageNet mean/std buffers imply).
    N, C, H, W = 2, 3, 32, 32
    # uint8 pixels in [0, 255] — matches the x.float()/255 contract and keeps the
    # HBM read at 1 byte/pixel.
    x = jax.random.randint(key, (N, C, H, W), 0, 256, dtype=jnp.int32).astype(jnp.uint8)

    m = jnp.array([0.485, 0.456, 0.406], dtype=jnp.float32)
    s = jnp.array([0.229, 0.224, 0.225], dtype=jnp.float32)

    # Pure-JAX reference (same math as the PyTorch module).
    ref = (x.astype(jnp.float32) / 255.0 - m[None, :, None, None]) / s[None, :, None, None]

    # Small per-block byte budget so this tiny demo exercises the tiled, pipelined
    # Pallas path (grid = (1, 8)) instead of the small-input fallback.
    demo_budget = 6 * 128 * 4

    out = jax.block_until_ready(preproc_norm(x, m, s, target_block_bytes=demo_budget))
    assert out.shape == (N, C, H, W) and out.dtype == jnp.float32
    # Folded scale/bias differs from the reference by ~1 ulp only.
    assert jnp.allclose(out, ref, atol=1e-5, rtol=1e-5), float(jnp.max(jnp.abs(out - ref)))

    # Default call at this size takes the small-input jnp fallback (grid == (1,1)).
    out_fb = jax.block_until_ready(preproc_norm(x, m, s))
    assert out_fb.dtype == jnp.float32
    assert jnp.allclose(out_fb, ref, atol=1e-5, rtol=1e-5)

    # Optional bf16 output: halves the write-dominated HBM traffic for downstream
    # consumers that accept it (f32 math, bf16 store only).
    out_bf16 = jax.block_until_ready(
        preproc_norm(x, m, s, out_dtype=jnp.bfloat16, target_block_bytes=demo_budget))
    assert out_bf16.dtype == jnp.bfloat16
    assert jnp.allclose(out_bf16.astype(jnp.float32), ref, atol=2e-2, rtol=2e-2)

    print("KERNEL_OK")
</pallas_src>

<mosaic_0001>
module attributes {stable_mosaic.version = 11 : i64} {
  func.func @_preproc_norm_kernel(%arg0: i32, %arg1: i32, %arg2: memref<6x128xi8, #tpu.memory_space<vmem>>, %arg3: memref<6x1xf32, #tpu.memory_space<vmem>>, %arg4: memref<6x1xf32, #tpu.memory_space<vmem>>, %arg5: memref<6x128xf32, #tpu.memory_space<vmem>>) attributes {dimension_semantics = [#tpu.dimension_semantics<parallel>, #tpu.dimension_semantics<parallel>], iteration_bounds = array<i64: 1, 8>, scalar_prefetch = 0 : i64, scratch_operands = 0 : i64, tpu.core_type = #tpu.core_type<tc>, window_params = [{transform_indices = @transform_0, window_bounds = array<i64: 6, 128>}, {transform_indices = @transform_1, window_bounds = array<i64: 6, 1>}, {transform_indices = @transform_2, window_bounds = array<i64: 6, 1>}, {transform_indices = @transform_3, window_bounds = array<i64: 6, 128>}]} {
    %c0 = arith.constant 0 : index
    %c0_0 = arith.constant 0 : index
    %0 = vector.load %arg2[%c0, %c0_0] : memref<6x128xi8, #tpu.memory_space<vmem>>, vector<6x128xi8>
    %1 = arith.uitofp %0 : vector<6x128xi8> to vector<6x128xf32>
    %c0_1 = arith.constant 0 : index
    %c0_2 = arith.constant 0 : index
    %2 = vector.load %arg3[%c0_1, %c0_2] : memref<6x1xf32, #tpu.memory_space<vmem>>, vector<6x1xf32>
    %3 = vector.broadcast %2 : vector<6x1xf32> to vector<6x128xf32>
    %4 = arith.mulf %1, %3 : vector<6x128xf32>
    %c0_3 = arith.constant 0 : index
    %c0_4 = arith.constant 0 : index
    %5 = vector.load %arg4[%c0_3, %c0_4] : memref<6x1xf32, #tpu.memory_space<vmem>>, vector<6x1xf32>
    %6 = vector.broadcast %5 : vector<6x1xf32> to vector<6x128xf32>
    %7 = arith.addf %4, %6 : vector<6x128xf32>
    %c0_5 = arith.constant 0 : index
    %c0_6 = arith.constant 0 : index
    %8 = vector.load %arg5[%c0_5, %c0_6] : memref<6x128xf32, #tpu.memory_space<vmem>>, vector<6x128xf32>
    tpu.vector_store %arg5[%c0_5, %c0_6], %7 {strides = array<i32>} : memref<6x128xf32, #tpu.memory_space<vmem>>, vector<6x128xf32>,
    return
  }
  func.func @transform_0(%arg0: i32, %arg1: i32) -> (i32, i32) {
    %c0_i32 = arith.constant 0 : i32
    return %arg0, %arg1 : i32, i32
  }
  func.func @transform_1(%arg0: i32, %arg1: i32) -> (i32, i32) {
    %c0_i32 = arith.constant 0 : i32
    %c0_i32_0 = arith.constant 0 : i32
    return %arg0, %c0_i32 : i32, i32
  }
  func.func @transform_2(%arg0: i32, %arg1: i32) -> (i32, i32) {
    %c0_i32 = arith.constant 0 : i32
    %c0_i32_0 = arith.constant 0 : i32
    return %arg0, %c0_i32 : i32, i32
  }
  func.func @transform_3(%arg0: i32, %arg1: i32) -> (i32, i32) {
    %c0_i32 = arith.constant 0 : i32
    return %arg0, %arg1 : i32, i32
  }
}

</mosaic_0001>

<bundles_post_ra>
// kernel: tpu_custom_call.1
= control target key start
LH: loop header
LB: loop body
LE: loop exit
PB: predicated region body
PF: predicated region fallthrough
CT: control target
= control target key end

     0   :  { %8 = vsyncpa [#allocation3], 0  ;;  %s658_s0 = inlined_call_operand.vmem [shape: u8[6,1024], index: 0, kind: input, shape index: {}]   ;;  %s659_s1 = inlined_call_operand.vmem [shape: f32[6,1], index: 1, kind: input, shape index: {}]   ;;  %s660_s2 = inlined_call_operand.vmem [shape: f32[6,1], index: 2, kind: input, shape index: {}]   ;;  %s661_s3 = inlined_call_operand.hbm [shape: f32[6,1024], index: 3, kind: output, shape index: {}]  }
   0x1   :  { %10 = vsyncpa [#allocation3 + $0x1], 0  ;;  %s540_s12 = smov 0   ;;  %s542_s13 = smov 0  }
   0x2   :  { %s544_s14 = smov 0   ;;  %s546_s15 = smov 0  }
   0x3   :  { %s548_s16 = smov 0   ;;  %s550_s17 = smov 0  }
   0x4 LB: > { %s368_s18 = sadd.s32 4294967295, %s516_s17   ;;  %s369_s19 = sadd.s32 4294967294, %s516_s17   ;;  %s516_s17 = sphi %s550_s17, %s16_s17   ;;  %s512_s16 = sphi %s548_s16, %s668_s16   ;;  %s508_s15 = sphi %s546_s15, %s667_s15   ;;  %s504_s14 = sphi %s544_s14, %s666_s14   ;;  %s500_s13 = sphi %s542_s13, %s665_s13   ;;  %s496_s12 = sphi %s540_s12, %s664_s12  }
   0x5   : > { %s25_s20 = sadd.s32 1, %s512_s16  ;;  %s117_s21 = sadd.s32 1, %s504_s14 }
   0x6   : > { %p26_p0 = scmp.ge.s32.totalorder %s25_s20, 8  ;;  %p127_p1 = scmp.ne.s32.totalorder %s504_s14, %s500_s13 }
   0x7   : > { %p128_p2 = scmp.eq.s32.totalorder %s368_s18, 7  ;;  %p133_p3 = scmp.ne.s32.totalorder %s500_s13, %s496_s12 }
   0x8   : > { %s670_s20 = smov (%p26_p0, %s25_s20), 0  ;;  %p134_p5 = scmp.eq.s32.totalorder %s369_s19, 7 }
   0x9   : > { %p580_p4 = por %p128_p2, %p127_p1  ;;  %s113_s23 = ssub.s32 %s512_s16, %s670_s20 }
   0xa   : > { %p374_p6 = scmp.ge.s32.totalorder %s516_s17, 1  ;;  %p115_p7 = scmp.eq.s32.totalorder %s113_s23, 0 }
   0xb   : > { %p587_p8 = por %p134_p5, %p133_p3  ;;  %p177_p9 = scmp.lt.s32.totalorder %s516_s17, 9 }
   0xc   : > { %s593_s25 = scalar_select %p115_p7, %s504_s14, %s117_s21  }
   0xd   : > { %p178_p10 = pnand %p374_p6, %p177_p9 }
   0xe   : > { %v232_v0 = vld [vmem:[%s659_s1] sm:$0x3f] (!%p178_p10)  ;;  %v518_v1 = vmov (!%p178_p10), 0   ;;  %p214_p11 = scmp.lt.s32.totalorder (!%p178_p10), %s508_s15, 7  ;;  %s209_s8 = sand.u32 (!%p178_p10), 1, %s500_s13  }
   0xf   : > { %181 = sbr.rel (%p178_p10) target bundleno = 164 (0xa4), region = 32  ;;  %437 = vset.pattern.permute.xlu0 (!%p178_p10), %v518_v1  ;;  %v239_v2 = vld [vmem:[%s660_s2] sm:$0x3f] (!%p178_p10)  ;;  %s375_s9 = sshll.u32 (!%p178_p10), %s209_s8, 3 }
  0x10   : > { %235 = vperm.xlu0 (!%p178_p10), %437, %v232_v0   ;;  %s378_s10 = sshll.u32 (!%p178_p10), %s508_s15, 7  ;;  %s211_s11 = scalar_lea.vmem (!%p178_p10), [#allocation2], %s375_s9 }
  0x11   : > { %s263_s18 = sshll.u32 (!%p178_p10), %s211_s11, 4  ;;  %s611_s23 = scalar_lea.hbm (!%p178_p10), %s661_s3, %s378_s10  ;;  %s613_s18 = int_to_ptr.vmem [resolvable:$true] %s263_s18 }
  0x12   : > { %s248_s26 = scalar_lea.sflag (!%p178_p10), [#allocation3], %s209_s8  ;;  %s438_s27 = scalar_lea.vmem (!%p178_p10), %s613_s18, 128 }
  0x13   : > { %p439_p12 = scmp.ne.s32.totalorder (!%p178_p10), %s613_s18, %s438_s27 }
  0x14   : > { %242 = vperm.xlu0 (!%p178_p10), %437, %v239_v2  }
  0x15   : > { %p440_p13 = pnand (!%p178_p10), %p439_p12, %p580_p4 }
  0x16   : > { %s215_s30 = scalar_select %p214_p11, %s508_s15, 7 }
  0x17   : > { %p441_p0 = pneg %p440_p13  ;;  %s519_s15 = smov [#allocation2]  }
  0x18   : > { %s376_s4 = sshll.u32 %s215_s30, 1  ;;  %s442_s28 = sshll.u32 %s519_s15, 4  ;;  %s443_s28 = int_to_ptr.vmem [resolvable:$false] %s442_s28 }
  0x19   : > { %s219_s7 = scalar_lea.vmem %s658_s0, %s376_s4  ;;  %s444_s29 = scalar_lea.vmem %s443_s28, 256 }
  0x1a   : > { %v228_v3 = vld [vmem:[%s219_s7] sm:$0x3]  ;;  %p445_p1 = scmp.lt.s32.totalorder %s613_s18, %s443_s28  ;;  %p446_p2 = scmp.lt.s32.totalorder %s444_s29, %s438_s27 }
  0x1b   : > { %v229_v4 = vunpack.c.0.s8 %v228_v3 }
  0x1c   : > { %p447_p3 = por %p446_p2, %p445_p1 }
  0x1d   : > { %v230_v5 = vand.u32 255, %v229_v4 }
  0x1e   : > { %p448_p5 = pnand %p447_p3, %p441_p0 }
  0x1f   : > { %v231_v6 = vcvt.s32.f32 %v230_v5 }
  0x8f   : > { %v236_v7 = vpop.permute.xlu0 %235 }
  0x90   : > { %v238_v8 = vmul.f32 %v236_v7, %v231_v6 }
  0x93   : > { %v243_v9 = vpop.permute.xlu0 %242 }
  0x94   : > { %v245_v10 = vadd.f32 %v243_v9, %v238_v8 }
  0x96   : > { %246 = vst [vmem:[%s211_s11] sm:$0x3f] %v245_v10 }
  0x97   : > { %451 = shalt.err (!%p448_p5)
}
  0x98   : > { %s452_s30 = scalar_lea.hbm %s611_s23, 128  ;;  %s456_s6 = scalar_lea.hbm %s661_s3, 1024 }
  0x99   : > { %p453_p6 = scmp.ne.s32.totalorder %s611_s23, %s452_s30  ;;  %p457_p10 = scmp.lt.u32.totalorder %s611_s23, %s661_s3 }
  0x9a   : > { %p458_p11 = scmp.lt.u32.totalorder %s456_s6, %s452_s30  ;;  %p460_p13 = scmp.lt.u32.totalorder %s452_s30, %s611_s23 }
  0x9b   : > { %p454_p7 = pnand %p453_p6, %p580_p4 }
  0x9c   : > { %p459_p12 = por %p458_p11, %p457_p10 }
  0x9d   : > { %p455_p9 = pneg %p454_p7 }
  0x9e   : > { %p461_p0 = por %p460_p13, %p459_p12 }
  0xa0   : > { %p462_p1 = pnand %p461_p0, %p455_p9 }
  0xa2   : > { %465 = shalt.err (!%p462_p1)
}
  0xa3   : > { %381 = dma.vmem_to_hbm [thread:$0]  (%p580_p4), %s613_s18, 128, %s611_s23, %s248_s26  }
  0xa4 PF: > { %p387_p2 = scmp.ge.s32.totalorder %s516_s17, 2  ;;  %s275_s9 = sand.u32 1, %s496_s12  }
  0xa5   : > { %s276_s10 = scalar_lea.sflag [#allocation3], %s275_s9 }
  0xa6   : > { %p384_p3 = pnand %p387_p2, %p587_p8 }
  0xa8   : > { %491 = dma.done.wait (!%p384_p3), %s276_s10, 128  }
  0xa9   : > { %493 = vsyncadd (!%p384_p3), %s276_s10, 4294967168  ;;  %s16_s17 = sadd.s32 1, %s516_s17   ;;  %s664_s12 = smov %s500_s13 }
  0xaa   : > { %p13_p5 = scmp.ge.s32.totalorder %s16_s17, 10   ;;  %s665_s13 = smov %s504_s14 }
  0xab   : > { %s666_s14 = smov %s593_s25  ;;  %s667_s15 = smov %s512_s16 }
  0xac   : > { %s668_s16 = smov %s670_s20  ;;  %15 = sbr.rel (!%p13_p5) target bundleno = 4 (0x4), region = 73 }
  0xb3   :  { %281 = vsyncpa [#allocation3], 1 }
  0xb4   :  { %283 = vsyncpa [#allocation3 + $0x1], 1 }

</bundles_post_ra>
